<compile_context>
chip_gen: v7x
topology: tpu7x:2x2x1
jax: 0.10.0
libtpu: 0.0.40
codegen_flags: <defaults>
</compile_context>

<pallas_src>
import jax
import jax.numpy as jnp
from jax.experimental import pallas as pl
from jax.experimental.pallas import tpu as pltpu

_LANES = 128
_TARGET_BLOCK_BYTES = 4 << 20      # ~4 MiB per (in or out) block
_VMEM_LIMIT_BYTES = 48 << 20       # < 64 MiB physical VMEM on v7x


def _drop_path_kernel(scale_ref, x_ref, o_ref):
    """scale_ref: (TB,1,1) f32 VMEM; x_ref/o_ref: (TB,TR,128) VMEM tiles."""
    o_ref[...] = x_ref[...] * scale_ref[...].astype(x_ref.dtype)


def _choose_block(B: int, R: int, itemsize: int):
    """Pick (TB, TR) so one block is ~_TARGET_BLOCK_BYTES and layout-legal."""
    bytes_per_row = _LANES * itemsize
    target_rows = max(8, _TARGET_BLOCK_BYTES // bytes_per_row)
    if R <= target_rows:
        # Small per-sample slab: take the full row dim (full-dim escape hatch,
        # no multiple-of-8 requirement) and pack samples along batch.
        TR = R
        TB = max(1, min(B, int(target_rows // max(R, 1))))
    else:
        # Large per-sample slab: one sample per block, tile rows (mult. of 8;
        # a partial last block is masked automatically by Pallas).
        TB = 1
        TR = max(8, (int(target_rows) // 8) * 8)
    return TB, TR


def drop_path(x, key, drop_prob: float = 0.0, training: bool = False,
              scale_by_keep: bool = True):
    """Pallas DropPath.

    x:   (B, ...) activation tensor (e.g. NCHW or (B, N, D)).
    key: jax.random key (or int seed) controlling the per-sample keep mask.
         Must vary per training step.
    """
    if drop_prob == 0.0 or not training:
        return x
    if key is None:
        raise ValueError("drop_path: a PRNG key is required when training "
                         "with drop_prob > 0 (do not reuse a fixed mask).")
    if isinstance(key, int):
        key = jax.random.PRNGKey(key)

    keep_prob = 1.0 - drop_prob
    orig_shape = x.shape
    B = int(orig_shape[0])
    F = 1
    for d in orig_shape[1:]:
        F *= int(d)

    # Per-sample keep decision + scale, computed once wrapper-side (B scalars).
    keep = jax.random.bernoulli(key, p=keep_prob, shape=(B,))
    scale = keep.astype(jnp.float32)
    if scale_by_keep and keep_prob > 0.0:
        scale = scale * jnp.float32(1.0 / keep_prob)
    scale3 = scale.reshape(B, 1, 1)

    # ---- Lane-dense (B, R, 128) view (reshape is free; pad only if needed) --
    xf = x.reshape(B, F)
    F_pad = ((F + _LANES - 1) // _LANES) * _LANES
    if F_pad != F:
        # Rare path for non-128-multiple feature sizes.
        xf = jnp.pad(xf, ((0, 0), (0, F_pad - F)))
    R = F_pad // _LANES
    x3 = xf.reshape(B, R, _LANES)

    TB, TR = _choose_block(B, R, jnp.dtype(x.dtype).itemsize)
    grid = (pl.cdiv(B, TB), pl.cdiv(R, TR))

    out3 = pl.pallas_call(
        _drop_path_kernel,
        out_shape=jax.ShapeDtypeStruct((B, R, _LANES), x.dtype),
        grid_spec=pl.GridSpec(
            grid=grid,
            in_specs=[
                pl.BlockSpec((TB, 1, 1), lambda b, r: (b, 0, 0)),
                pl.BlockSpec((TB, TR, _LANES), lambda b, r: (b, r, 0)),
            ],
            out_specs=pl.BlockSpec((TB, TR, _LANES), lambda b, r: (b, r, 0)),
        ),
        compiler_params=pltpu.CompilerParams(
            dimension_semantics=("parallel", "parallel"),
            vmem_limit_bytes=_VMEM_LIMIT_BYTES),
    )(scale3, x3)

    out = out3.reshape(B, F_pad)
    if F_pad != F:
        out = out[:, :F]
    return out.reshape(orig_shape)


def _drop_path_ref(x, key, drop_prob, scale_by_keep=True):
    """Pure-JAX reference (same mask draw as the kernel wrapper)."""
    keep_prob = 1.0 - drop_prob
    keep = jax.random.bernoulli(key, p=keep_prob, shape=(x.shape[0],))
    scale = keep.astype(jnp.float32)
    if scale_by_keep and keep_prob > 0.0:
        scale = scale / keep_prob
    scale = scale.reshape((-1,) + (1,) * (x.ndim - 1))
    return (x.astype(jnp.float32) * scale).astype(x.dtype)


class DropPath:
    """Mirror of the PyTorch DropPath module (no learned parameters)."""

    def __init__(self, drop_prob: float = 0.0, scale_by_keep: bool = True):
        self.drop_prob = drop_prob
        self.scale_by_keep = scale_by_keep
        self.training = True

    def __call__(self, x, key=None):
        return drop_path(x, key, self.drop_prob, self.training,
                         self.scale_by_keep)


if __name__ == "__main__":
    root = jax.random.PRNGKey(0)
    kx, kmask, kx2, kmask2 = jax.random.split(root, 4)

    # --- NCHW case (F = 4*16*16 = 1024, multiple of 128 -> no padding) ------
    B, C, H, W = 2, 4, 16, 16
    x = jax.random.normal(kx, (B, C, H, W), dtype=jnp.float32)

    mod = DropPath(drop_prob=0.3, scale_by_keep=True)
    mod.training = True
    y = jax.block_until_ready(mod(x, key=kmask))
    assert y.shape == x.shape and y.dtype == x.dtype

    y_ref = _drop_path_ref(x, kmask, 0.3, True)
    assert bool(jnp.allclose(y, y_ref, atol=1e-5)), "mismatch vs reference"

    keep_prob = 1.0 - mod.drop_prob
    for b in range(B):
        yb, xb = y[b], x[b]
        ok_zero = bool(jnp.all(yb == 0.0))
        ok_scaled = bool(jnp.allclose(yb, xb / keep_prob, atol=1e-5))
        assert ok_zero or ok_scaled, "per-sample mask semantics violated"

    # --- Non-128-multiple feature case (exercises the pad/unpad path) -------
    x2 = jax.random.normal(kx2, (2, 3, 5, 7), dtype=jnp.float32)   # F = 105
    y2 = jax.block_until_ready(drop_path(x2, kmask2, 0.5, True, True))
    y2_ref = _drop_path_ref(x2, kmask2, 0.5, True)
    assert y2.shape == x2.shape
    assert bool(jnp.allclose(y2, y2_ref, atol=1e-5)), "padded-path mismatch"

    # --- Eval path: identity -------------------------------------------------
    mod.training = False
    y_eval = jax.block_until_ready(mod(x, key=kmask))
    assert bool(jnp.allclose(y_eval, x))

    print("KERNEL_OK")
</pallas_src>

<mosaic_0001>
module attributes {stable_mosaic.version = 11 : i64} {
  func.func @_drop_path_kernel(%arg0: i32, %arg1: i32, %arg2: memref<2x1x1xf32, #tpu.memory_space<vmem>>, %arg3: memref<2x8x128xf32, #tpu.memory_space<vmem>>, %arg4: memref<2x8x128xf32, #tpu.memory_space<vmem>>) attributes {dimension_semantics = [#tpu.dimension_semantics<parallel>, #tpu.dimension_semantics<parallel>], iteration_bounds = array<i64: 1, 1>, scalar_prefetch = 0 : i64, scratch_operands = 0 : i64, tpu.core_type = #tpu.core_type<tc>, window_params = [{transform_indices = @transform_0, window_bounds = array<i64: 2, 1, 1>}, {transform_indices = @transform_1, window_bounds = array<i64: 2, 8, 128>}, {transform_indices = @transform_2, window_bounds = array<i64: 2, 8, 128>}]} {
    %c0 = arith.constant 0 : index
    %c0_0 = arith.constant 0 : index
    %c0_1 = arith.constant 0 : index
    %0 = vector.load %arg3[%c0, %c0_0, %c0_1] : memref<2x8x128xf32, #tpu.memory_space<vmem>>, vector<2x8x128xf32>
    %c0_2 = arith.constant 0 : index
    %c0_3 = arith.constant 0 : index
    %c0_4 = arith.constant 0 : index
    %1 = vector.load %arg2[%c0_2, %c0_3, %c0_4] : memref<2x1x1xf32, #tpu.memory_space<vmem>>, vector<2x1x1xf32>
    %2 = vector.broadcast %1 : vector<2x1x1xf32> to vector<2x8x128xf32>
    %3 = arith.mulf %0, %2 : vector<2x8x128xf32>
    %c0_5 = arith.constant 0 : index
    %c0_6 = arith.constant 0 : index
    %c0_7 = arith.constant 0 : index
    %4 = vector.load %arg4[%c0_5, %c0_6, %c0_7] : memref<2x8x128xf32, #tpu.memory_space<vmem>>, vector<2x8x128xf32>
    tpu.vector_store %arg4[%c0_5, %c0_6, %c0_7], %3 {strides = array<i32>} : memref<2x8x128xf32, #tpu.memory_space<vmem>>, vector<2x8x128xf32>,
    return
  }
  func.func @transform_0(%arg0: i32, %arg1: i32) -> (i32, i32, i32) {
    %c0_i32 = arith.constant 0 : i32
    %c0_i32_0 = arith.constant 0 : i32
    %c0_i32_1 = arith.constant 0 : i32
    return %arg0, %c0_i32, %c0_i32_0 : i32, i32, i32
  }
  func.func @transform_1(%arg0: i32, %arg1: i32) -> (i32, i32, i32) {
    %c0_i32 = arith.constant 0 : i32
    %c0_i32_0 = arith.constant 0 : i32
    return %arg0, %arg1, %c0_i32 : i32, i32, i32
  }
  func.func @transform_2(%arg0: i32, %arg1: i32) -> (i32, i32, i32) {
    %c0_i32 = arith.constant 0 : i32
    %c0_i32_0 = arith.constant 0 : i32
    return %arg0, %arg1, %c0_i32 : i32, i32, i32
  }
}

</mosaic_0001>

<bundles_post_ra>
// kernel: tpu_custom_call.1
= control target key start
LH: loop header
LB: loop body
LE: loop exit
PB: predicated region body
PF: predicated region fallthrough
CT: control target
= control target key end

     0   :  { %7 = vsyncpa [#allocation3], 0  ;;  %s181_s0 = inlined_call_operand.vmem [shape: f32[2,1,1], index: 0, kind: input, shape index: {}]   ;;  %s182_s1 = inlined_call_operand.hbm [shape: f32[2,8,128], index: 1, kind: input, shape index: {}]   ;;  %s183_s2 = inlined_call_operand.hbm [shape: f32[2,8,128], index: 2, kind: output, shape index: {}]  }
   0x1   :  { %8 = vsyncpa [#allocation4], 0  ;;  %s125_s9 = smov [#allocation2]   ;;  %s77_s13 = scalar_lea.hbm %s182_s1, 256 }
   0x2   :  { %s16_s10 = sshll.u32 %s125_s9, 4  ;;  %p78_p0 = scmp.ne.s32.totalorder %s182_s1, %s77_s13  ;;  %s17_s10 = int_to_ptr.vmem [resolvable:$true] %s16_s10 }
   0x3   :  { %p81_p1 = scmp.lt.u32.totalorder %s77_s13, %s182_s1 }
   0x5   :  { %p83_p2 = pnand %p81_p1, %p78_p0 }
   0x7   :  { %86 = shalt.err (!%p83_p2)
}
   0x8   :  { %s87_s18 = scalar_lea.vmem %s17_s10, 256  ;;  %p92_p4 = scmp.lt.s32.totalorder %s17_s10, %s17_s10 }
   0x9   :  { %p88_p3 = scmp.ne.s32.totalorder %s17_s10, %s87_s18  ;;  %p93_p5 = scmp.lt.s32.totalorder %s87_s18, %s87_s18 }
   0xb   :  { %p94_p6 = por %p93_p5, %p92_p4 }
   0xd   :  { %p95_p7 = pnand %p94_p6, %p88_p3 }
   0xf   :  { %98 = shalt.err (!%p95_p7)
}
  0x10   :  { %s126_s19 = smov 128   ;;  %s127_s20 = smov 8  }
  0x11   :  { %22 = dma.hbm_to_vmem [thread:$0]  %s182_s1, 256, %s17_s10, [#allocation3], %s126_s19, %s126_s19, %s127_s20  }
  0x12   :  { %121 = dma.done.wait [#allocation3], 256  }
  0x13   :  { %122 = vsyncadd [#allocation3], 4294967040  ;;  %v128_v0 = vmov 0   ;;  %v69_v1 = vld [vmem:[%s181_s0] ss:$0 sm:$0xff]  ;;  %v27_v6 = vld [vmem:[#allocation2 + $0x8] sm:$0xff] }
  0x14   :  { %76 = vset.pattern.permute.xlu0 %v128_v0  ;;  %v70_v2 = vld [vmem:[%s181_s0 + $0x1] ss:$0 sm:$0xff]  ;;  %s129_s27 = smov [#allocation5]  }
  0x15   :  { %41 = vperm.xlu0 %76, %v69_v1   ;;  %v26_v3 = vld [vmem:[#allocation2] sm:$0xff]  ;;  %s57_s1 = sshll.u32 %s129_s27, 4  ;;  %s58_s1 = int_to_ptr.vmem [resolvable:$true] %s57_s1 }
  0x16   :  { %s99_s28 = scalar_lea.vmem %s58_s1, 256  ;;  %p104_p9 = scmp.lt.s32.totalorder %s58_s1, %s58_s1 }
  0x17   :  { %p100_p8 = scmp.ne.s32.totalorder %s58_s1, %s99_s28  ;;  %p105_p10 = scmp.lt.s32.totalorder %s99_s28, %s99_s28 }
  0x19   :  { %45 = vperm.xlu0 %76, %v70_v2   ;;  %p106_p11 = por %p105_p10, %p104_p9 }
  0x1b   :  { %p107_p12 = pnand %p106_p11, %p100_p8 }
  0x94   :  { %v42_v4 = vpop.permute.xlu0 %41 }
  0x95   :  { %v48_v5 = vmul.f32 %v42_v4, %v26_v3 }
  0x97   :  { %50 = vst [vmem:[#allocation5] sm:$0xff] %v48_v5 }
  0x98   :  { %v46_v7 = vpop.permute.xlu0 %45 }
  0x99   :  { %v49_v8 = vmul.f32 %v46_v7, %v27_v6 }
  0x9b   :  { %51 = vst [vmem:[#allocation5 + $0x8] sm:$0xff] %v49_v8 }
  0x9c   :  { %110 = shalt.err (!%p107_p12)
}
  0x9d   :  { %s111_s30 = scalar_lea.hbm %s183_s2, 256 }
  0x9e   :  { %p112_p13 = scmp.ne.s32.totalorder %s183_s2, %s111_s30  ;;  %p115_p0 = scmp.lt.u32.totalorder %s111_s30, %s183_s2 }
  0xa0   :  { %p117_p1 = pnand %p115_p0, %p112_p13 }
  0xa2   :  { %120 = shalt.err (!%p117_p1)
}
  0xa3   :  { %63 = dma.vmem_to_hbm [thread:$0]  %s58_s1, 256, %s183_s2, [#allocation4], %s126_s19, %s126_s19, %s127_s20  }
  0xa4   :  { %123 = dma.done.wait [#allocation4], 256  }
  0xa5   :  { %124 = vsyncadd [#allocation4], 4294967040 }
  0xa6   :  { %67 = vsyncpa [#allocation3], 1 }
  0xa7   :  { %68 = vsyncpa [#allocation4], 1 }

</bundles_post_ra>
